<compile_context>
chip_gen: v6e
topology: v6e:2x2x1
jax: 0.10.0
libtpu: 0.0.40
codegen_flags: <defaults>
</compile_context>

<pallas_src>
import functools

import numpy as np

import jax
import jax.numpy as jnp
from jax.experimental import pallas as pl
from jax.experimental.pallas import tpu as pltpu


def _preconv_block_kernel(x_ref, scale_ref, shift_ref, alpha_ref, w_ref, mask_ref,
                          o_ref, *, kh_size, kw_size, padding, dilation, width):
    """One batch element: folded BN -> PReLU -> 'same-anchored' conv.

    x_ref    : (1, Cin, H*W)       activations, spatial flattened onto lanes
    scale_ref: (Cin, 1)            folded BN scale
    shift_ref: (Cin, 1)            folded BN shift
    alpha_ref: (Cin, 1)            PReLU slope
    w_ref    : (Kh*Kw, Cout, Cin)  conv taps
    mask_ref : (Kh*Kw, H*W)        {0,1} border masks (realize the conv zero pad)
    o_ref    : (1, Cout, H*W)      conv output sampled on the input grid
                                   (wrapper applies the stride subsample / crop)
    """
    hw = x_ref.shape[2]

    x = x_ref[0]                              # (Cin, H*W)
    scale = scale_ref[...]                    # (Cin, 1)
    shift = shift_ref[...]
    alpha = alpha_ref[...]
    masks = mask_ref[...]                     # (Kh*Kw, H*W)

    # Inference BatchNorm folded to scale/shift, then per-channel PReLU.
    # Lane-dense VPU work (256 lanes), done once per element.
    y = x * scale + shift
    y = jnp.where(y >= 0.0, y, alpha * y)

    acc = jnp.zeros((o_ref.shape[1], hw), jnp.float32)
    for ikh in range(kh_size):
        for ikw in range(kw_size):
            t = ikh * kw_size + ikw
            d = (ikh * dilation - padding) * width + (ikw * dilation - padding)
            # shifted[p] == y[p + d]; wrap-around and out-of-image positions are
            # zeroed by the precomputed border mask (== the conv's zero padding).
            shifted = y if d == 0 else pltpu.roll(y, shift=(-d) % hw, axis=1)
            tap = shifted * masks[t:t + 1]                     # (Cin, H*W)
            # Channel contraction on the MXU, f32 accumulate (VALU only does the
            # small accumulator add).  Cast tap/w to bf16 here on v6e/v7x.
            acc = acc + jnp.dot(w_ref[t], tap,
                                preferred_element_type=jnp.float32)
    o_ref[0] = acc.astype(o_ref.dtype)


def preconv_block(x_nchw, params, *, stride, padding, dilation=1, eps=1e-5):
    """PyTorch-convention wrapper: NCHW in, NCHW out (eval-mode BN, PReLU, conv)."""
    w_oihw = params["conv_weight"]
    n, c_in, h, w = x_nchw.shape
    c_out, _, kh, kw = w_oihw.shape
    h_out = (h + 2 * padding - dilation * (kh - 1) - 1) // stride + 1
    w_out = (w + 2 * padding - dilation * (kw - 1) - 1) // stride + 1
    if 2 * padding > dilation * (kh - 1) or 2 * padding > dilation * (kw - 1):
        # TODO(synk): over-padded convs need the in-kernel grid extended past H/W.
        raise NotImplementedError("padding exceeds the receptive-field overhang")
    hw = h * w

    # Free reshape (NCHW is contiguous): no HBM transpose at the kernel boundary.
    x_flat = x_nchw.reshape(n, c_in, hw).astype(jnp.float32)
    # OIHW -> (Kh*Kw, Cout, Cin) taps (tiny tensor, negligible cost).
    w_taps = jnp.transpose(w_oihw, (2, 3, 0, 1)).reshape(kh * kw, c_out, c_in)
    w_taps = w_taps.astype(jnp.float32)

    # Fold eval-mode BN into per-channel scale/shift.
    gamma = jnp.asarray(params["bn_gamma"], jnp.float32)
    beta = jnp.asarray(params["bn_beta"], jnp.float32)
    mean = jnp.asarray(params["bn_mean"], jnp.float32)
    var = jnp.asarray(params["bn_var"], jnp.float32)
    scale_vec = gamma * jax.lax.rsqrt(var + eps)
    shift_vec = beta - mean * scale_vec
    scale = scale_vec.reshape(c_in, 1)
    shift = shift_vec.reshape(c_in, 1)
    alpha = jnp.asarray(params["prelu_alpha"], jnp.float32).reshape(c_in, 1)

    # Static per-tap border masks over the flattened H*W grid (compile-time numpy).
    rows = np.arange(h).reshape(h, 1)
    cols = np.arange(w).reshape(1, w)
    mask_rows = []
    for ikh in range(kh):
        for ikw in range(kw):
            dh = ikh * dilation - padding
            dw = ikw * dilation - padding
            m = ((rows + dh >= 0) & (rows + dh < h) &
                 (cols + dw >= 0) & (cols + dw < w))
            mask_rows.append(m.reshape(1, hw))
    masks = jnp.asarray(np.concatenate(mask_rows, axis=0), jnp.float32)  # (Kh*Kw, H*W)

    kernel = functools.partial(
        _preconv_block_kernel, kh_size=kh, kw_size=kw,
        padding=padding, dilation=dilation, width=w)

    out_flat = pl.pallas_call(
        kernel,
        out_shape=jax.ShapeDtypeStruct((n, c_out, hw), jnp.float32),
        grid=(n,),
        in_specs=[
            pl.BlockSpec((1, c_in, hw), lambda i: (i, 0, 0)),       # x
            pl.BlockSpec((c_in, 1), lambda i: (0, 0)),              # BN scale
            pl.BlockSpec((c_in, 1), lambda i: (0, 0)),              # BN shift
            pl.BlockSpec((c_in, 1), lambda i: (0, 0)),              # PReLU alpha
            pl.BlockSpec((kh * kw, c_out, c_in), lambda i: (0, 0, 0)),  # weights
            pl.BlockSpec((kh * kw, hw), lambda i: (0, 0)),          # border masks
        ],
        out_specs=pl.BlockSpec((1, c_out, hw), lambda i: (i, 0, 0)),
        compiler_params=pltpu.CompilerParams(
            dimension_semantics=("parallel",)),
    )(x_flat, scale, shift, alpha, w_taps, masks)

    out = out_flat.reshape(n, c_out, h, w)
    if stride != 1 or h_out != h or w_out != w:
        # The kernel computes the stride-1 output anchored on the input grid;
        # striding / valid-cropping is a cheap strided slice here.
        out = out[:, :, :(h_out - 1) * stride + 1:stride,
                  :(w_out - 1) * stride + 1:stride]
    return out


if __name__ == "__main__":
    key = jax.random.PRNGKey(0)
    k_x, k_g, k_b, k_m, k_v, k_a, k_w = jax.random.split(key, 7)

    N, C_IN, H, W = 2, 4, 16, 16
    C_OUT, KH, KW = 8, 3, 3
    STRIDE, PADDING, DILATION = 1, 1, 1
    EPS = 1e-5

    x = jax.random.normal(k_x, (N, C_IN, H, W), jnp.float32)
    params = {
        "bn_gamma": 1.0 + 0.1 * jax.random.normal(k_g, (C_IN,), jnp.float32),
        "bn_beta": 0.1 * jax.random.normal(k_b, (C_IN,), jnp.float32),
        "bn_mean": 0.1 * jax.random.normal(k_m, (C_IN,), jnp.float32),
        "bn_var": jax.random.uniform(k_v, (C_IN,), jnp.float32, minval=0.5, maxval=1.5),
        "prelu_alpha": 0.25 * jnp.ones((C_IN,), jnp.float32)
                       + 0.05 * jax.random.normal(k_a, (C_IN,), jnp.float32),
        "conv_weight": 0.1 * jax.random.normal(k_w, (C_OUT, C_IN, KH, KW), jnp.float32),
    }

    out = preconv_block(x, params, stride=STRIDE, padding=PADDING,
                        dilation=DILATION, eps=EPS)
    out = jax.block_until_ready(out)

    # Pure-JAX reference (same semantics as the PyTorch forward, eval-mode BN).
    g = params["bn_gamma"].reshape(1, C_IN, 1, 1)
    b = params["bn_beta"].reshape(1, C_IN, 1, 1)
    m = params["bn_mean"].reshape(1, C_IN, 1, 1)
    v = params["bn_var"].reshape(1, C_IN, 1, 1)
    a = params["prelu_alpha"].reshape(1, C_IN, 1, 1)
    y_ref = (x - m) * jax.lax.rsqrt(v + EPS) * g + b
    y_ref = jnp.where(y_ref >= 0.0, y_ref, a * y_ref)
    ref = jax.lax.conv_general_dilated(
        y_ref, params["conv_weight"], window_strides=(STRIDE, STRIDE),
        padding=[(PADDING, PADDING), (PADDING, PADDING)],
        rhs_dilation=(DILATION, DILATION),
        dimension_numbers=("NCHW", "OIHW", "NCHW"))

    assert out.shape == ref.shape, (out.shape, ref.shape)
    # MXU f32 matmuls may run as multi-pass bf16 depending on TPU generation;
    # tolerance is sized for that while still catching tap/mask/layout bugs.
    assert jnp.allclose(out, ref, atol=1e-2, rtol=1e-2), \
        float(jnp.max(jnp.abs(out - ref)))
    print("KERNEL_OK")
</pallas_src>

<mosaic_0001>
module attributes {stable_mosaic.version = 11 : i64} {
  func.func @_preconv_block_kernel(%arg0: i32, %arg1: memref<1x4x256xf32, #tpu.memory_space<vmem>>, %arg2: memref<4x1xf32, #tpu.memory_space<vmem>>, %arg3: memref<4x1xf32, #tpu.memory_space<vmem>>, %arg4: memref<4x1xf32, #tpu.memory_space<vmem>>, %arg5: memref<9x8x4xf32, #tpu.memory_space<vmem>>, %arg6: memref<9x256xf32, #tpu.memory_space<vmem>>, %arg7: memref<1x8x256xf32, #tpu.memory_space<vmem>>) attributes {dimension_semantics = [#tpu.dimension_semantics<parallel>], iteration_bounds = array<i64: 2>, scalar_prefetch = 0 : i64, scratch_operands = 0 : i64, tpu.core_type = #tpu.core_type<tc>, window_params = [{transform_indices = @transform_0, window_bounds = array<i64: 1, 4, 256>}, {pipeline_mode = #tpu.pipeline_mode<synchronous>, transform_indices = @transform_1, window_bounds = array<i64: 4, 1>}, {pipeline_mode = #tpu.pipeline_mode<synchronous>, transform_indices = @transform_2, window_bounds = array<i64: 4, 1>}, {pipeline_mode = #tpu.pipeline_mode<synchronous>, transform_indices = @transform_3, window_bounds = array<i64: 4, 1>}, {pipeline_mode = #tpu.pipeline_mode<synchronous>, transform_indices = @transform_4, window_bounds = array<i64: 9, 8, 4>}, {pipeline_mode = #tpu.pipeline_mode<synchronous>, transform_indices = @transform_5, window_bounds = array<i64: 9, 256>}, {transform_indices = @transform_6, window_bounds = array<i64: 1, 8, 256>}]} {
    %c0 = arith.constant 0 : index
    %c0_0 = arith.constant 0 : index
    %c0_1 = arith.constant 0 : index
    %0 = vector.load %arg1[%c0, %c0_0, %c0_1] : memref<1x4x256xf32, #tpu.memory_space<vmem>>, vector<1x4x256xf32>
    %1 = vector.shape_cast %0 : vector<1x4x256xf32> to vector<4x256xf32>
    %c0_2 = arith.constant 0 : index
    %c0_3 = arith.constant 0 : index
    %2 = vector.load %arg2[%c0_2, %c0_3] : memref<4x1xf32, #tpu.memory_space<vmem>>, vector<4x1xf32>
    %c0_4 = arith.constant 0 : index
    %c0_5 = arith.constant 0 : index
    %3 = vector.load %arg3[%c0_4, %c0_5] : memref<4x1xf32, #tpu.memory_space<vmem>>, vector<4x1xf32>
    %c0_6 = arith.constant 0 : index
    %c0_7 = arith.constant 0 : index
    %4 = vector.load %arg4[%c0_6, %c0_7] : memref<4x1xf32, #tpu.memory_space<vmem>>, vector<4x1xf32>
    %c0_8 = arith.constant 0 : index
    %c0_9 = arith.constant 0 : index
    %5 = vector.load %arg6[%c0_8, %c0_9] : memref<9x256xf32, #tpu.memory_space<vmem>>, vector<9x256xf32>
    %6 = vector.broadcast %2 : vector<4x1xf32> to vector<4x256xf32>
    %7 = arith.mulf %1, %6 : vector<4x256xf32>
    %8 = vector.broadcast %3 : vector<4x1xf32> to vector<4x256xf32>
    %9 = arith.addf %7, %8 : vector<4x256xf32>
    %cst = arith.constant 0.000000e+00 : f32
    %10 = vector.broadcast %cst : f32 to vector<4x256xf32>
    %11 = arith.cmpf oge, %9, %10 : vector<4x256xf32>
    %12 = vector.broadcast %4 : vector<4x1xf32> to vector<4x256xf32>
    %13 = arith.mulf %12, %9 : vector<4x256xf32>
    %14 = arith.select %11, %9, %13 : vector<4x256xi1>, vector<4x256xf32>
    %cst_10 = arith.constant 0.000000e+00 : f32
    %15 = vector.broadcast %cst_10 : f32 to vector<8x256xf32>
    %c17_i32 = arith.constant 17 : i32
    %16 = tpu.dynamic_rotate %14 by %c17_i32 dim 1 : vector<4x256xf32>, i32 -> vector<4x256xf32>
    %17 = vector.extract_strided_slice %5 {offsets = [0, 0], sizes = [1, 256], strides = [1, 1]} : vector<9x256xf32> to vector<1x256xf32>
    %18 = vector.broadcast %17 : vector<1x256xf32> to vector<4x256xf32>
    %19 = arith.mulf %16, %18 : vector<4x256xf32>
    %c0_11 = arith.constant 0 : index
    %c0_12 = arith.constant 0 : index
    %c0_13 = arith.constant 0 : index
    %20 = vector.load %arg5[%c0_11, %c0_12, %c0_13] : memref<9x8x4xf32, #tpu.memory_space<vmem>>, vector<1x8x4xf32>
    %21 = vector.shape_cast %20 : vector<1x8x4xf32> to vector<8x4xf32>
    %cst_14 = arith.constant dense<0.000000e+00> : vector<8x256xf32>
    %22 = tpu.matmul %21, %19, %cst_14 {dimension_numbers = #tpu.dot_dimension_numbers<[1], [0], [0], [1], [0, 0, 1, 1], [], []>} : vector<8x4xf32>, vector<4x256xf32>, vector<8x256xf32> -> vector<8x256xf32>
    %23 = arith.addf %15, %22 : vector<8x256xf32>
    %c16_i32 = arith.constant 16 : i32
    %24 = tpu.dynamic_rotate %14 by %c16_i32 dim 1 : vector<4x256xf32>, i32 -> vector<4x256xf32>
    %25 = vector.extract_strided_slice %5 {offsets = [1, 0], sizes = [1, 256], strides = [1, 1]} : vector<9x256xf32> to vector<1x256xf32>
    %26 = vector.broadcast %25 : vector<1x256xf32> to vector<4x256xf32>
    %27 = arith.mulf %24, %26 : vector<4x256xf32>
    %c1 = arith.constant 1 : index
    %c0_15 = arith.constant 0 : index
    %c0_16 = arith.constant 0 : index
    %28 = vector.load %arg5[%c1, %c0_15, %c0_16] : memref<9x8x4xf32, #tpu.memory_space<vmem>>, vector<1x8x4xf32>
    %29 = vector.shape_cast %28 : vector<1x8x4xf32> to vector<8x4xf32>
    %cst_17 = arith.constant dense<0.000000e+00> : vector<8x256xf32>
    %30 = tpu.matmul %29, %27, %cst_17 {dimension_numbers = #tpu.dot_dimension_numbers<[1], [0], [0], [1], [0, 0, 1, 1], [], []>} : vector<8x4xf32>, vector<4x256xf32>, vector<8x256xf32> -> vector<8x256xf32>
    %31 = arith.addf %23, %30 : vector<8x256xf32>
    %c15_i32 = arith.constant 15 : i32
    %32 = tpu.dynamic_rotate %14 by %c15_i32 dim 1 : vector<4x256xf32>, i32 -> vector<4x256xf32>
    %33 = vector.extract_strided_slice %5 {offsets = [2, 0], sizes = [1, 256], strides = [1, 1]} : vector<9x256xf32> to vector<1x256xf32>
    %34 = vector.broadcast %33 : vector<1x256xf32> to vector<4x256xf32>
    %35 = arith.mulf %32, %34 : vector<4x256xf32>
    %c2 = arith.constant 2 : index
    %c0_18 = arith.constant 0 : index
    %c0_19 = arith.constant 0 : index
    %36 = vector.load %arg5[%c2, %c0_18, %c0_19] : memref<9x8x4xf32, #tpu.memory_space<vmem>>, vector<1x8x4xf32>
    %37 = vector.shape_cast %36 : vector<1x8x4xf32> to vector<8x4xf32>
    %cst_20 = arith.constant dense<0.000000e+00> : vector<8x256xf32>
    %38 = tpu.matmul %37, %35, %cst_20 {dimension_numbers = #tpu.dot_dimension_numbers<[1], [0], [0], [1], [0, 0, 1, 1], [], []>} : vector<8x4xf32>, vector<4x256xf32>, vector<8x256xf32> -> vector<8x256xf32>
    %39 = arith.addf %31, %38 : vector<8x256xf32>
    %c1_i32 = arith.constant 1 : i32
    %40 = tpu.dynamic_rotate %14 by %c1_i32 dim 1 : vector<4x256xf32>, i32 -> vector<4x256xf32>
    %41 = vector.extract_strided_slice %5 {offsets = [3, 0], sizes = [1, 256], strides = [1, 1]} : vector<9x256xf32> to vector<1x256xf32>
    %42 = vector.broadcast %41 : vector<1x256xf32> to vector<4x256xf32>
    %43 = arith.mulf %40, %42 : vector<4x256xf32>
    %c3 = arith.constant 3 : index
    %c0_21 = arith.constant 0 : index
    %c0_22 = arith.constant 0 : index
    %44 = vector.load %arg5[%c3, %c0_21, %c0_22] : memref<9x8x4xf32, #tpu.memory_space<vmem>>, vector<1x8x4xf32>
    %45 = vector.shape_cast %44 : vector<1x8x4xf32> to vector<8x4xf32>
    %cst_23 = arith.constant dense<0.000000e+00> : vector<8x256xf32>
    %46 = tpu.matmul %45, %43, %cst_23 {dimension_numbers = #tpu.dot_dimension_numbers<[1], [0], [0], [1], [0, 0, 1, 1], [], []>} : vector<8x4xf32>, vector<4x256xf32>, vector<8x256xf32> -> vector<8x256xf32>
    %47 = arith.addf %39, %46 : vector<8x256xf32>
    %48 = vector.extract_strided_slice %5 {offsets = [4, 0], sizes = [1, 256], strides = [1, 1]} : vector<9x256xf32> to vector<1x256xf32>
    %49 = vector.broadcast %48 : vector<1x256xf32> to vector<4x256xf32>
    %50 = arith.mulf %14, %49 : vector<4x256xf32>
    %c4 = arith.constant 4 : index
    %c0_24 = arith.constant 0 : index
    %c0_25 = arith.constant 0 : index
    %51 = vector.load %arg5[%c4, %c0_24, %c0_25] : memref<9x8x4xf32, #tpu.memory_space<vmem>>, vector<1x8x4xf32>
    %52 = vector.shape_cast %51 : vector<1x8x4xf32> to vector<8x4xf32>
    %cst_26 = arith.constant dense<0.000000e+00> : vector<8x256xf32>
    %53 = tpu.matmul %52, %50, %cst_26 {dimension_numbers = #tpu.dot_dimension_numbers<[1], [0], [0], [1], [0, 0, 1, 1], [], []>} : vector<8x4xf32>, vector<4x256xf32>, vector<8x256xf32> -> vector<8x256xf32>
    %54 = arith.addf %47, %53 : vector<8x256xf32>
    %c255_i32 = arith.constant 255 : i32
    %55 = tpu.dynamic_rotate %14 by %c255_i32 dim 1 : vector<4x256xf32>, i32 -> vector<4x256xf32>
    %56 = vector.extract_strided_slice %5 {offsets = [5, 0], sizes = [1, 256], strides = [1, 1]} : vector<9x256xf32> to vector<1x256xf32>
    %57 = vector.broadcast %56 : vector<1x256xf32> to vector<4x256xf32>
    %58 = arith.mulf %55, %57 : vector<4x256xf32>
    %c5 = arith.constant 5 : index
    %c0_27 = arith.constant 0 : index
    %c0_28 = arith.constant 0 : index
    %59 = vector.load %arg5[%c5, %c0_27, %c0_28] : memref<9x8x4xf32, #tpu.memory_space<vmem>>, vector<1x8x4xf32>
    %60 = vector.shape_cast %59 : vector<1x8x4xf32> to vector<8x4xf32>
    %cst_29 = arith.constant dense<0.000000e+00> : vector<8x256xf32>
    %61 = tpu.matmul %60, %58, %cst_29 {dimension_numbers = #tpu.dot_dimension_numbers<[1], [0], [0], [1], [0, 0, 1, 1], [], []>} : vector<8x4xf32>, vector<4x256xf32>, vector<8x256xf32> -> vector<8x256xf32>
    %62 = arith.addf %54, %61 : vector<8x256xf32>
    %c241_i32 = arith.constant 241 : i32
    %63 = tpu.dynamic_rotate %14 by %c241_i32 dim 1 : vector<4x256xf32>, i32 -> vector<4x256xf32>
    %64 = vector.extract_strided_slice %5 {offsets = [6, 0], sizes = [1, 256], strides = [1, 1]} : vector<9x256xf32> to vector<1x256xf32>
    %65 = vector.broadcast %64 : vector<1x256xf32> to vector<4x256xf32>
    %66 = arith.mulf %63, %65 : vector<4x256xf32>
    %c6 = arith.constant 6 : index
    %c0_30 = arith.constant 0 : index
    %c0_31 = arith.constant 0 : index
    %67 = vector.load %arg5[%c6, %c0_30, %c0_31] : memref<9x8x4xf32, #tpu.memory_space<vmem>>, vector<1x8x4xf32>
    %68 = vector.shape_cast %67 : vector<1x8x4xf32> to vector<8x4xf32>
    %cst_32 = arith.constant dense<0.000000e+00> : vector<8x256xf32>
    %69 = tpu.matmul %68, %66, %cst_32 {dimension_numbers = #tpu.dot_dimension_numbers<[1], [0], [0], [1], [0, 0, 1, 1], [], []>} : vector<8x4xf32>, vector<4x256xf32>, vector<8x256xf32> -> vector<8x256xf32>
    %70 = arith.addf %62, %69 : vector<8x256xf32>
    %c240_i32 = arith.constant 240 : i32
    %71 = tpu.dynamic_rotate %14 by %c240_i32 dim 1 : vector<4x256xf32>, i32 -> vector<4x256xf32>
    %72 = vector.extract_strided_slice %5 {offsets = [7, 0], sizes = [1, 256], strides = [1, 1]} : vector<9x256xf32> to vector<1x256xf32>
    %73 = vector.broadcast %72 : vector<1x256xf32> to vector<4x256xf32>
    %74 = arith.mulf %71, %73 : vector<4x256xf32>
    %c7 = arith.constant 7 : index
    %c0_33 = arith.constant 0 : index
    %c0_34 = arith.constant 0 : index
    %75 = vector.load %arg5[%c7, %c0_33, %c0_34] : memref<9x8x4xf32, #tpu.memory_space<vmem>>, vector<1x8x4xf32>
    %76 = vector.shape_cast %75 : vector<1x8x4xf32> to vector<8x4xf32>
    %cst_35 = arith.constant dense<0.000000e+00> : vector<8x256xf32>
    %77 = tpu.matmul %76, %74, %cst_35 {dimension_numbers = #tpu.dot_dimension_numbers<[1], [0], [0], [1], [0, 0, 1, 1], [], []>} : vector<8x4xf32>, vector<4x256xf32>, vector<8x256xf32> -> vector<8x256xf32>
    %78 = arith.addf %70, %77 : vector<8x256xf32>
    %c239_i32 = arith.constant 239 : i32
    %79 = tpu.dynamic_rotate %14 by %c239_i32 dim 1 : vector<4x256xf32>, i32 -> vector<4x256xf32>
    %80 = vector.extract_strided_slice %5 {offsets = [8, 0], sizes = [1, 256], strides = [1, 1]} : vector<9x256xf32> to vector<1x256xf32>
    %81 = vector.broadcast %80 : vector<1x256xf32> to vector<4x256xf32>
    %82 = arith.mulf %79, %81 : vector<4x256xf32>
    %c8 = arith.constant 8 : index
    %c0_36 = arith.constant 0 : index
    %c0_37 = arith.constant 0 : index
    %83 = vector.load %arg5[%c8, %c0_36, %c0_37] : memref<9x8x4xf32, #tpu.memory_space<vmem>>, vector<1x8x4xf32>
    %84 = vector.shape_cast %83 : vector<1x8x4xf32> to vector<8x4xf32>
    %cst_38 = arith.constant dense<0.000000e+00> : vector<8x256xf32>
    %85 = tpu.matmul %84, %82, %cst_38 {dimension_numbers = #tpu.dot_dimension_numbers<[1], [0], [0], [1], [0, 0, 1, 1], [], []>} : vector<8x4xf32>, vector<4x256xf32>, vector<8x256xf32> -> vector<8x256xf32>
    %86 = arith.addf %78, %85 : vector<8x256xf32>
    %c0_39 = arith.constant 0 : index
    %c0_40 = arith.constant 0 : index
    %c0_41 = arith.constant 0 : index
    %87 = vector.load %arg7[%c0_39, %c0_40, %c0_41] : memref<1x8x256xf32, #tpu.memory_space<vmem>>, vector<1x8x256xf32>
    %88 = vector.shape_cast %87 : vector<1x8x256xf32> to vector<8x256xf32>
    %89 = vector.shape_cast %86 : vector<8x256xf32> to vector<1x8x256xf32>
    tpu.vector_store %arg7[%c0_39, %c0_40, %c0_41], %89 {strides = array<i32>} : memref<1x8x256xf32, #tpu.memory_space<vmem>>, vector<1x8x256xf32>,
    return
  }
  func.func @transform_0(%arg0: i32) -> (i32, i32, i32) {
    %c0_i32 = arith.constant 0 : i32
    %c0_i32_0 = arith.constant 0 : i32
    %c0_i32_1 = arith.constant 0 : i32
    return %arg0, %c0_i32, %c0_i32_0 : i32, i32, i32
  }
  func.func @transform_1(%arg0: i32) -> (i32, i32) {
    %c0_i32 = arith.constant 0 : i32
    %c0_i32_0 = arith.constant 0 : i32
    %c0_i32_1 = arith.constant 0 : i32
    return %c0_i32, %c0_i32_0 : i32, i32
  }
  func.func @transform_2(%arg0: i32) -> (i32, i32) {
    %c0_i32 = arith.constant 0 : i32
    %c0_i32_0 = arith.constant 0 : i32
    %c0_i32_1 = arith.constant 0 : i32
    return %c0_i32, %c0_i32_0 : i32, i32
  }
  func.func @transform_3(%arg0: i32) -> (i32, i32) {
    %c0_i32 = arith.constant 0 : i32
    %c0_i32_0 = arith.constant 0 : i32
    %c0_i32_1 = arith.constant 0 : i32
    return %c0_i32, %c0_i32_0 : i32, i32
  }
  func.func @transform_4(%arg0: i32) -> (i32, i32, i32) {
    %c0_i32 = arith.constant 0 : i32
    %c0_i32_0 = arith.constant 0 : i32
    %c0_i32_1 = arith.constant 0 : i32
    %c0_i32_2 = arith.constant 0 : i32
    return %c0_i32, %c0_i32_0, %c0_i32_1 : i32, i32, i32
  }
  func.func @transform_5(%arg0: i32) -> (i32, i32) {
    %c0_i32 = arith.constant 0 : i32
    %c0_i32_0 = arith.constant 0 : i32
    %c0_i32_1 = arith.constant 0 : i32
    return %c0_i32, %c0_i32_0 : i32, i32
  }
  func.func @transform_6(%arg0: i32) -> (i32, i32, i32) {
    %c0_i32 = arith.constant 0 : i32
    %c0_i32_0 = arith.constant 0 : i32
    %c0_i32_1 = arith.constant 0 : i32
    return %arg0, %c0_i32, %c0_i32_0 : i32, i32, i32
  }
}

</mosaic_0001>

<bundles_post_ra>
// kernel: tpu_custom_call.1
= control target key start
LH: loop header
LB: loop body
LE: loop exit
PB: predicated region body
PF: predicated region fallthrough
CT: control target
= control target key end

     0   :  { %11 = vsyncpa [#allocation3], 0  ;;  %s1720_s0 = inlined_call_operand.vmem [shape: f32[2,4,256], index: 0, kind: input, shape index: {}]   ;;  %s1721_s1 = inlined_call_operand.vmem [shape: f32[4,1], index: 1, kind: input, shape index: {}]   ;;  %s1722_s2 = inlined_call_operand.vmem [shape: f32[4,1], index: 2, kind: input, shape index: {}]   ;;  %s1723_s3 = inlined_call_operand.vmem [shape: f32[4,1], index: 3, kind: input, shape index: {}]   ;;  %s1724_s4 = inlined_call_operand.vmem [shape: f32[9,8,4], index: 4, kind: input, shape index: {}]   ;;  %s1725_s5 = inlined_call_operand.vmem [shape: f32[9,256], index: 5, kind: input, shape index: {}]   ;;  %s1726_s6 = inlined_call_operand.hbm [shape: f32[2,8,256], index: 6, kind: output, shape index: {}]  }
   0x1   :  { %13 = vsyncpa [#allocation3 + $0x1], 0  ;;  %s1495_s21 = smov 0   ;;  %s1497_s22 = smov 0  }
   0x2   :  { %s1499_s23 = smov 0   ;;  %s1501_s24 = smov 0  }
   0x3 LB: > { %s1516_s25 = sadd.s32 4294967295, %s1446_s24   ;;  %s1283_s26 = sadd.s32 4294967294, %s1446_s24   ;;  %s1446_s24 = sphi %s1501_s24, %s1732_s24   ;;  %s1442_s23 = sphi %s1499_s23, %s1731_s23   ;;  %s1438_s22 = sphi %s1497_s22, %s1730_s22   ;;  %s1434_s21 = sphi %s1495_s21, %s1729_s21  }
   0x4   : > { %s1520_s27 = sadd.s32 1, %s1446_s24   ;;  %s157_s28 = sadd.s32 1, %s1442_s23 }
   0x5   : > { %s154_s29 = ssub.s32 %s1446_s24, %s1520_s27  ;;  %p167_p0 = scmp.ne.s32.totalorder %s1442_s23, %s1438_s22 }
   0x6   : > { %p155_p1 = scmp.eq.s32.totalorder %s154_s29, 0  ;;  %p168_p2 = scmp.eq.s32.totalorder %s1516_s25, 1 }
   0x7   : > { %p173_p3 = scmp.ne.s32.totalorder %s1438_s22, %s1434_s21  ;;  %p174_p4 = scmp.eq.s32.totalorder %s1283_s26, 1 }
   0x8   : > { %s1531_s30 = scalar_select %p155_p1, %s1442_s23, %s157_s28  }
   0x9   : > { %p1533_p5 = por %p168_p2, %p167_p0  ;;  %p1537_p6 = por %p174_p4, %p173_p3 }
   0xa   : > { %p1286_p7 = scmp.ge.s32.totalorder %s1446_s24, 1  ;;  %p215_p8 = scmp.lt.s32.totalorder %s1446_s24, 3 }
   0xc   : > { %p216_p9 = pnand %p1286_p7, %p215_p8 }
   0xd   : > { %p245_p10 = scmp.lt.s32.totalorder (!%p216_p9), %s1516_s25, 1  ;;  %s1451_s20 = smov (!%p216_p9), 16  }
   0xe   : > { %219 = sbr.rel (%p216_p9) target bundleno = 520 (0x208), region = 44  ;;  %s1452_s26 = smov (!%p216_p9), 17  }
   0xf   : > { %s1453_s28 = smov (!%p216_p9), 15   ;;  %s1454_s29 = smov (!%p216_p9), 1  }
  0x10   : > { %s1455_s9 = smov (!%p216_p9), 127   ;;  %s1456_s10 = smov (!%p216_p9), 113  }
  0x11   : > { %s1457_s11 = smov (!%p216_p9), 112   ;;  %s1458_s12 = smov (!%p216_p9), 111  }
  0x13   : > { %v251_v0 = vld [vmem:[%s1721_s1] sm:$0xf]  ;;  %v1448_v1 = vmov 0   ;;  %v1449_v4 = vmov 839922192   ;;  %v265_v6 = vlaneseq  ;;  %s246_s15 = scalar_select %p245_p10, %s1516_s25, 1 }
  0x14   : > { %1384 = vset.pattern.permute.xlu0 %v1448_v1  ;;  %1385 = vset.pattern.permute.xlu1 %v1448_v1  ;;  %v253_v2 = vld [vmem:[%s1723_s3] sm:$0xf]  ;;  %v263_v5 = vunpack.c.l.s4 %v1449_v4  ;;  %v1450_v22 = vmov 0.0   ;;  %v1586_v29 = vld [vmem:[%s1725_s5 + $0x8] sm:$0xff]  ;;  %vm346_vm2 = vcmask 1043456   ;;  %vm342_vm4 = vcmask 31744  }
  0x15   : > { %260 = vperm.xlu0 %1384, %v251_v0   ;;  %287 = vperm.xlu1 %1385, %v253_v2   ;;  %v252_v3 = vld [vmem:[%s1722_s2] sm:$0xf]  ;;  %v1554_v8 = vshrl.u32 %v265_v6, 7  ;;  %s1332_s16 = sshll.u32 %s246_s15, 3  ;;  %v1574_v25 = vand.u32 127, %v265_v6  ;;  %v1290_v45 = vld [vmem:[%s1724_s4 + $0x8] sm:$0xff] }
  0x16   : > { %v264_v7 = vunpack.c.0.s8 %v263_v5  ;;  %s249_s19 = scalar_lea.vmem %s1720_s0, %s1332_s16  ;;  %417 = vmatprep.mubr.f32.mxu0 %v1450_v22  ;;  %497 = vmatprep.mubr.f32.mxu1 %v1450_v22  ;;  %v1581_v28 = vld [vmem:[%s1725_s5] sm:$0xff] }
  0x17   : > { %v250_v12 = vld [vmem:[%s249_s19] sm:$0xff]  ;;  %v332_v26 = vsub.s32 1, %v1554_v8  ;;  %v708_v27 = vsub.s32 4, %v1554_v8  ;;  %vm327_vm1 = vcmp.lt.s32.totalorder %v1574_v25, 16  ;;  %v314_v33 = vsub.s32 0, %v1554_v8 }
  0x18   : > { %v267_v9 = vsub.s32 %v264_v7, %v1554_v8  ;;  %vm309_vm3 = vcmp.lt.s32.totalorder %v1574_v25, 17  ;;  %v513_v39 = vsub.s32 2, %v1554_v8  ;;  %vm508_vm5 = vcmp.lt.s32.totalorder %v1574_v25, 15  ;;  %v322_v56 = vld [vmem:[%s1724_s4] sm:$0xff] }
  0x19   : > { %273 = vperm.xlu0 %1384, %v252_v3   ;;  %v333_v31 = vrot.slane %v1581_v28, %v332_v26  ;;  %v337_v32 = vrot.slane %v1586_v29, %v332_v26  ;;  %v709_v35 = vrot.slane %v1581_v28, %v708_v27  ;;  %v713_v36 = vrot.slane %v1586_v29, %v708_v27  ;;  %v1297_v3 = vld [vmem:[%s1724_s4 + $0x10] sm:$0xff] }
  0x1a   : > { %v315_v43 = vrot.slane %v1581_v28, %v314_v33  ;;  %v319_v44 = vrot.slane %v1586_v29, %v314_v33  ;;  %v514_v50 = vrot.slane %v1581_v28, %v513_v39  ;;  %v518_v54 = vrot.slane %v1586_v29, %v513_v39 }
  0x1b   : > { %v716_v47 = vcombine.low %v709_v35, %v713_v36  ;;  %v614_v55 = vsub.s32 3, %v1554_v8  ;;  %vm609_vm6 = vcmp.lt.s32.totalorder %v1574_v25, 1  ;;  %v812_v61 = vsub.s32 5, %v1554_v8 }
  0x1c   : > { %vm807_vm7 = vcmp.lt.s32.totalorder %v1574_v25, 127  ;;  %vm908_vm8 = vcmp.lt.s32.totalorder %v1574_v25, 113  ;;  %v1014_v27 = vsub.s32 7, %v1554_v8  ;;  %vm1009_vm9 = vcmp.lt.s32.totalorder %v1574_v25, 112 }
  0x1d   : > { %v615_v1 = vrot.slane %v1581_v28, %v614_v55  ;;  %v619_v2 = vrot.slane %v1586_v29, %v614_v55  ;;  %vm1110_vm10 = vcmp.lt.s32.totalorder %v1574_v25, 111 }
  0x1e   : > { %v1015_v36 = vrot.slane %v1581_v28, %v1014_v27 }
  0x90   : > { %v261_v10 = vpop.permute.xlu0 %260  ;;  %v288_v17 = vpop.permute.xlu1 %287 }
  0x91   : > { %v268_v11 = vrot.slane %v261_v10, %v267_v9  ;;  %v913_v10 = vsub.s32 6, %v1554_v8 }
  0x93   : > { %v270_v14 = vmul.f32 %v268_v11, %v250_v12  ;;  %v918_v26 = vrot.slane %v1586_v29, %v913_v10 }
  0x94   : > { %v274_v13 = vpop.permute.xlu0 %273 }
  0x95   : > { %v281_v15 = vrot.slane %v274_v13, %v267_v9  ;;  %v813_v9 = vrot.slane %v1581_v28, %v812_v61 }
  0x97   : > { %v283_v16 = vadd.f32 %v281_v15, %v270_v14  ;;  %v817_v14 = vrot.slane %v1586_v29, %v812_v61  ;;  %v1301_v15 = vld [vmem:[%s1724_s4 + $0x18] sm:$0xff] }
  0x99   : > { %v291_v18 = vcombine.high %v283_v16, %v283_v16  ;;  %v293_v19 = vmul.f32 %v288_v17, %v283_v16  ;;  %vm284_vm0 = vcmp.ge.f32.partialorder %v283_v16, 0.0 }
  0x9b   : > { %v294_v20 = vmul.f32 %v291_v18, %v288_v17 }
  0x9d   : > { %v297_v21 = vcombine.low %v293_v19, %v294_v20  ;;  %v914_v20 = vrot.slane %v1581_v28, %v913_v10  ;;  %v1321_v28 = vld [vmem:[%s1725_s5 + $0x10] ss:$0 sm:$0xff] }
  0x9f   : > { %v1562_v23 = vsel %vm284_vm0, %v283_v16, %v297_v21  ;;  %v1305_v16 = vld [vmem:[%s1724_s4 + $0x20] sm:$0xff] }
  0xa0   : > { %323 = vrot.lane.b32.xlu1 %v1562_v23, %s1451_s20  ;;  %v301_v24 = vcombine.high %v1562_v23, %v1562_v23  ;;  %v718_v58 = vmul.f32 %v716_v47, %v1562_v23 }
  0xa2   : > { %325 = vrot.lane.b32.xlu0 %v301_v24, %s1451_s20  ;;  %v722_v5 = vcombine.high %v718_v58, %v718_v58 }
  0xa4   : > { %303 = vrot.lane.b32.xlu1 %v1562_v23, %s1452_s26 }
  0xa6   : > { %305 = vrot.lane.b32.xlu0 %v301_v24, %s1452_s26 }
  0xa8   : > { %504 = vrot.lane.b32.xlu1 %v1562_v23, %s1453_s28 }
  0xaa   : > { %506 = vrot.lane.b32.xlu0 %v301_v24, %s1453_s28 }
  0xac   : > { %605 = vrot.lane.b32.xlu1 %v1562_v23, %s1454_s29 }
  0xae   : > { %607 = vrot.lane.b32.xlu0 %v301_v24, %s1454_s29 }
  0xb0   : > { %803 = vrot.lane.b32.xlu1 %v1562_v23, %s1455_s9 }
  0xb2   : > { %805 = vrot.lane.b32.xlu0 %v301_v24, %s1455_s9  ;;  %s242_s9 = sand.u32 1, %s1438_s22  }
  0xb3   : > { %s1210_s17 = scalar_lea.sflag [#allocation3], %s242_s9 }
  0xb4   : > { %904 = vrot.lane.b32.xlu1 %v1562_v23, %s1456_s10 }
  0xb6   : > { %906 = vrot.lane.b32.xlu0 %v301_v24, %s1456_s10  ;;  %s1287_s10 = sshll.u32 %s242_s9, 4 }
  0xb8   : > { %1005 = vrot.lane.b32.xlu1 %v1562_v23, %s1457_s11 }
  0xba   : > { %1007 = vrot.lane.b32.xlu0 %v301_v24, %s1457_s11  ;;  %s1333_s11 = sshll.u32 %s1516_s25, 8  ;;  %s1459_s25 = smov [#allocation2]  }
  0xbb   : > { %s1222_s16 = scalar_lea.hbm %s1726_s6, %s1333_s11  ;;  %s1390_s19 = sshll.u32 %s1459_s25, 4  ;;  %s1391_s19 = int_to_ptr.vmem [resolvable:$false] %s1390_s19 }
  0xbc   : > { %1106 = vrot.lane.b32.xlu1 %v1562_v23, %s1458_s12  ;;  %s1392_s20 = scalar_lea.vmem %s1391_s19, 512 }
  0xbe   : > { %1108 = vrot.lane.b32.xlu0 %v301_v24, %s1458_s12  ;;  %s244_s12 = scalar_lea.vmem [#allocation2], %s1287_s10 }
  0xbf   : > { %s1224_s13 = sshll.u32 %s244_s12, 4  ;;  %s1225_s13 = int_to_ptr.vmem [resolvable:$true] %s1224_s13 }
  0xc0   : > { %s1386_s18 = scalar_lea.vmem %s1225_s13, 256  ;;  %p1393_p0 = scmp.lt.s32.totalorder %s1225_s13, %s1391_s19 }
  0xc1   : > { %p1387_p11 = scmp.ne.s32.totalorder %s1225_s13, %s1386_s18  ;;  %p1394_p1 = scmp.lt.s32.totalorder %s1392_s20, %s1386_s18 }
  0xc3   : > { %p1388_p12 = pnand %p1387_p11, %p1533_p5  ;;  %p1395_p2 = por %p1394_p1, %p1393_p0 }
  0xc5   : > { %p1389_p13 = pneg %p1388_p12 }
  0xc7   : > { %p1396_p3 = pnand %p1395_p2, %p1389_p13 }
 0x112   : > { %v324_v30 = vpop.permute.xlu1 %323 }
 0x114   : > { %v326_v34 = vpop.permute.xlu0 %325 }
 0x115   : > { %v328_v37 = vsel %vm327_vm1, %v324_v30, %v326_v34  ;;  %v329_v38 = vsel %vm327_vm1, %v326_v34, %v324_v30  ;;  %v1309_v30 = vld [vmem:[%s1724_s4 + $0x28] sm:$0xff] }
 0x116   : > { %v338_v40 = vmul.f32 %v333_v31, %v329_v38  ;;  %v304_v41 = vpop.permute.xlu1 %303  ;;  %v339_v42 = vmul.f32 %v337_v32, %v328_v37  ;;  %v1019_v37 = vrot.slane %v1586_v29, %v1014_v27  ;;  %v1313_v38 = vld [vmem:[%s1724_s4 + $0x30] sm:$0xff]  ;;  %v1322_v29 = vld [vmem:[%s1725_s5 + $0x18] ss:$0 sm:$0xff] }
 0x118   : > { %1291 = vmatprep.subr.msk.mxu0 %vm346_vm2, %v339_v42  ;;  %v306_v46 = vpop.permute.xlu0 %305 }
 0x119   : > { %v310_v48 = vsel %vm309_vm3, %v304_v41, %v306_v46  ;;  %v311_v49 = vsel %vm309_vm3, %v306_v46, %v304_v41  ;;  %1292 = vmatpush1.msk.msra.mxu0 %vm346_vm2, %v338_v40 }
 0x11a   : > { %v320_v51 = vmul.f32 %v315_v43, %v311_v49  ;;  %v505_v52 = vpop.permute.xlu1 %504  ;;  %v321_v53 = vmul.f32 %v319_v44, %v310_v48  ;;  %1293 = vmatmul.mubr.msk.f32.vlgmr.msra.gmra.mxu0 %vm342_vm4, %v1290_v45  ;;  %v1317_v44 = vld [vmem:[%s1724_s4 + $0x38] sm:$0xff] }
 0x11b   : > { %596 = vmatprep.mubr.f32.mxu0 %v1450_v22 }
 0x11c   : > { %1294 = vmatprep.subr.msk.mxu1 %vm346_vm2, %v321_v53  ;;  %v507_v57 = vpop.permute.xlu0 %506 }
 0x11d   : > { %v509_v59 = vsel %vm508_vm5, %v505_v52, %v507_v57  ;;  %v510_v60 = vsel %vm508_vm5, %v507_v57, %v505_v52  ;;  %1295 = vmatpush1.msk.msra.mxu1 %vm346_vm2, %v320_v51 }
 0x11e   : > { %v519_v62 = vmul.f32 %v514_v50, %v510_v60  ;;  %v520_v63 = vmul.f32 %v518_v54, %v509_v59  ;;  %v606_v0 = vpop.permute.xlu1 %605  ;;  %1296 = vmatmul.mubr.msk.f32.vlgmr.msra.gmra.mxu1 %vm342_vm4, %v322_v56  ;;  %v1323_v50 = vld [vmem:[%s1724_s4 + $0x40] sm:$0xff] }
 0x11f   : > { %697 = vmatprep.mubr.f32.mxu1 %v1450_v22 }
 0x120   : > { %1298 = vmatprep.subr.msk.mxu0 %vm346_vm2, %v520_v63  ;;  %v608_v4 = vpop.permute.xlu0 %607 }
 0x121   : > { %v610_v6 = vsel %vm609_vm6, %v606_v0, %v608_v4  ;;  %v611_v7 = vsel %vm609_vm6, %v608_v4, %v606_v0  ;;  %1299 = vmatpush1.msk.msra.mxu0 %vm346_vm2, %v519_v62 }
 0x122   : > { %v620_v11 = vmul.f32 %v615_v1, %v611_v7  ;;  %v621_v12 = vmul.f32 %v619_v2, %v610_v6  ;;  %v804_v13 = vpop.permute.xlu1 %803  ;;  %1306 = vmatprep.subr.msk.mxu0 %vm346_vm2, %v722_v5  ;;  %1300 = vmatmul.mubr.msk.f32.vlgmr.msra.gmra.mxu0 %vm342_vm4, %v1297_v3 }
 0x123   : > { %1307 = vmatpush1.msk.msra.mxu0 %vm346_vm2, %v718_v58  ;;  %794 = vmatprep.mubr.f32.mxu0 %v1450_v22 }
 0x124   : > { %1302 = vmatprep.subr.msk.mxu1 %vm346_vm2, %v621_v12  ;;  %v806_v17 = vpop.permute.xlu0 %805 }
 0x125   : > { %v808_v18 = vsel %vm807_vm7, %v804_v13, %v806_v17  ;;  %v809_v19 = vsel %vm807_vm7, %v806_v17, %v804_v13  ;;  %1303 = vmatpush1.msk.msra.mxu1 %vm346_vm2, %v620_v11 }
 0x126   : > { %v818_v21 = vmul.f32 %v813_v9, %v808_v18  ;;  %v819_v23 = vmul.f32 %v817_v14, %v809_v19  ;;  %v905_v24 = vpop.permute.xlu1 %904  ;;  %1304 = vmatmul.mubr.msk.f32.vlgmr.msra.gmra.mxu1 %vm342_vm4, %v1301_v15  ;;  %1308 = vmatmul.mubr.msk.f32.vlgmr.msra.gmra.mxu0 %vm342_vm4, %v1305_v16 }
 0x127   : > { %895 = vmatprep.mubr.f32.mxu1 %v1450_v22  ;;  %996 = vmatprep.mubr.f32.mxu0 %v1450_v22 }
 0x128   : > { %1310 = vmatprep.subr.msk.mxu1 %vm346_vm2, %v819_v23  ;;  %v907_v31 = vpop.permute.xlu0 %906 }
 0x129   : > { %v909_v32 = vsel %vm908_vm8, %v905_v24, %v907_v31  ;;  %v910_v33 = vsel %vm908_vm8, %v907_v31, %v905_v24  ;;  %1311 = vmatpush1.msk.msra.mxu1 %vm346_vm2, %v818_v21 }
 0x12a   : > { %v919_v8 = vmul.f32 %v914_v20, %v909_v32  ;;  %v920_v34 = vmul.f32 %v918_v26, %v910_v33  ;;  %v1006_v35 = vpop.permute.xlu1 %1005  ;;  %1312 = vmatmul.mubr.msk.f32.vlgmr.msra.gmra.mxu1 %vm342_vm4, %v1309_v30 }
 0x12b   : > { %1097 = vmatprep.mubr.f32.mxu1 %v1450_v22 }
 0x12c   : > { %1314 = vmatprep.subr.msk.mxu0 %vm346_vm2, %v920_v34  ;;  %v1008_v39 = vpop.permute.xlu0 %1007 }
 0x12d   : > { %v1010_v40 = vsel %vm1009_vm9, %v1006_v35, %v1008_v39  ;;  %v1011_v41 = vsel %vm1009_vm9, %v1008_v39, %v1006_v35  ;;  %1315 = vmatpush1.msk.msra.mxu0 %vm346_vm2, %v919_v8 }
 0x12e   : > { %v1020_v42 = vmul.f32 %v1015_v36, %v1010_v40  ;;  %v1021_v43 = vmul.f32 %v1019_v37, %v1011_v41  ;;  %1316 = vmatmul.mubr.msk.f32.vlgmr.msra.gmra.mxu0 %vm342_vm4, %v1313_v38  ;;  %v1107_v45 = vpop.permute.xlu1 %1106 }
 0x12f   : > { %1198 = vmatprep.mubr.f32.mxu0 %v1450_v22 }
 0x130   : > { %1318 = vmatprep.subr.msk.mxu1 %vm346_vm2, %v1021_v43  ;;  %v1109_v25 = vpop.permute.xlu0 %1108 }
 0x131   : > { %v1111_v46 = vsel %vm1110_vm10, %v1107_v45, %v1109_v25  ;;  %v1112_v47 = vsel %vm1110_vm10, %v1109_v25, %v1107_v45  ;;  %1319 = vmatpush1.msk.msra.mxu1 %vm346_vm2, %v1020_v42 }
 0x132   : > { %v1121_v48 = vmul.f32 %v1321_v28, %v1111_v46  ;;  %v1122_v49 = vmul.f32 %v1322_v29, %v1112_v47  ;;  %1320 = vmatmul.mubr.msk.f32.vlgmr.msra.gmra.mxu1 %vm342_vm4, %v1317_v44 }
 0x134   : > { %1324 = vmatprep.subr.msk.mxu0 %vm346_vm2, %v1122_v49 }
 0x135   : > { %1325 = vmatpush1.msk.msra.mxu0 %vm346_vm2, %v1121_v48 }
 0x136   : > { %1326 = vmatmul.mubr.msk.f32.vlgmr.msra.gmra.mxu0 %vm342_vm4, %v1323_v50 }
 0x1da   : > { %v419_v22 = vpop.f32.mrf.mxu0 }
 0x1dc   : > { %v421_v51 = vpop.f32.mrf.mxu0 }
 0x1de   : > { %v499_v52 = vpop.f32.mrf.mxu1 }
 0x1df   : > { %v500_v53 = vadd.f32 %v499_v52, %v419_v22 }
 0x1e0   : > { %v501_v54 = vpop.f32.mrf.mxu1 }
 0x1e1   : > { %v502_v55 = vadd.f32 %v501_v54, %v421_v51 }
 0x1e2   : > { %v598_v56 = vpop.f32.mrf.mxu0 }
 0x1e3   : > { %v603_v57 = vadd.f32 %v598_v56, %v500_v53 }
 0x1e4   : > { %v600_v58 = vpop.f32.mrf.mxu0 }
 0x1e5   : > { %v604_v59 = vadd.f32 %v600_v58, %v502_v55 }
 0x1e6   : > { %v699_v60 = vpop.f32.mrf.mxu1  ;;  %v796_v61 = vpop.f32.mrf.mxu0 }
 0x1e7   : > { %v704_v62 = vadd.f32 %v699_v60, %v603_v57 }
 0x1e8   : > { %v701_v63 = vpop.f32.mrf.mxu1  ;;  %v798_v2 = vpop.f32.mrf.mxu0 }
 0x1e9   : > { %v705_v0 = vadd.f32 %v701_v63, %v604_v59  ;;  %v801_v1 = vadd.f32 %v796_v61, %v704_v62 }
 0x1ea   : > { %v897_v3 = vpop.f32.mrf.mxu1 }
 0x1eb   : > { %v802_v4 = vadd.f32 %v798_v2, %v705_v0  ;;  %v902_v5 = vadd.f32 %v897_v3, %v801_v1 }
 0x1ec   : > { %v899_v6 = vpop.f32.mrf.mxu1 }
 0x1ed   : > { %v903_v9 = vadd.f32 %v899_v6, %v802_v4 }
 0x1ee   : > { %v998_v7 = vpop.f32.mrf.mxu0 }
 0x1ef   : > { %v1003_v10 = vadd.f32 %v998_v7, %v902_v5 }
 0x1f0   : > { %v1000_v11 = vpop.f32.mrf.mxu0 }
 0x1f1   : > { %v1004_v14 = vadd.f32 %v1000_v11, %v903_v9 }
 0x1f2   : > { %v1099_v12 = vpop.f32.mrf.mxu1 }
 0x1f3   : > { %v1104_v15 = vadd.f32 %v1099_v12, %v1003_v10 }
 0x1f4   : > { %v1101_v13 = vpop.f32.mrf.mxu1 }
 0x1f5   : > { %v1105_v17 = vadd.f32 %v1101_v13, %v1004_v14 }
 0x1f6   : > { %v1200_v16 = vpop.f32.mrf.mxu0 }
 0x1f7   : > { %v1205_v18 = vadd.f32 %v1200_v16, %v1104_v15 }
 0x1f8   : > { %v1202_v19 = vpop.f32.mrf.mxu0 }
 0x1f9   : > { %1207 = vst [vmem:[%s244_s12] sm:$0xff] %v1205_v18  ;;  %v1206_v20 = vadd.f32 %v1202_v19, %v1105_v17 }
 0x1fb   : > { %1208 = vst [vmem:[%s244_s12 + $0x8] sm:$0xff] %v1206_v20 }
 0x1fc   : > { %1399 = shalt.err (!%p1396_p3)
}
 0x1fd   : > { %s1400_s26 = scalar_lea.hbm %s1222_s16, 256  ;;  %s1404_s9 = scalar_lea.hbm %s1726_s6, 512 }
 0x1fe   : > { %p1401_p4 = scmp.ne.s32.totalorder %s1222_s16, %s1400_s26  ;;  %p1405_p9 = scmp.lt.s32.totalorder %s1222_s16, %s1726_s6 }
 0x1ff   : > { %p1406_p10 = scmp.lt.s32.totalorder %s1404_s9, %s1400_s26 }
 0x200   : > { %p1402_p7 = pnand %p1401_p4, %p1533_p5 }
 0x201   : > { %p1407_p11 = por %p1406_p10, %p1405_p9 }
 0x202   : > { %p1403_p8 = pneg %p1402_p7 }
 0x204   : > { %p1408_p12 = pnand %p1407_p11, %p1403_p8 }
 0x206   : > { %1411 = shalt.err (!%p1408_p12)
}
 0x207   : > { %1334 = dma.vmem_to_hbm [thread:$0]  (%p1533_p5), %s1225_s13, 256, %s1222_s16, %s1210_s17  }
 0x208 PF: > { %p1340_p13 = scmp.ge.s32.totalorder %s1446_s24, 2  ;;  %s1236_s12 = sand.u32 1, %s1434_s21  }
 0x209   : > { %s1237_s14 = scalar_lea.sflag [#allocation3], %s1236_s12 }
 0x20a   : > { %p1337_p0 = pnand %p1340_p13, %p1537_p6 }
 0x20c   : > { %p1338_p1 = pneg %p1337_p0 }
 0x20e   : > { %1429 = dma.done.wait (%p1338_p1), %s1237_s14, 256  }
 0x20f   : > { %1431 = vsyncadd (%p1338_p1), %s1237_s14, 4294967040  ;;  %p16_p2 = scmp.ge.s32.totalorder %s1520_s27, 4   ;;  %s1729_s21 = smov %s1438_s22 }
 0x210   : > { %s1730_s22 = smov %s1442_s23  ;;  %s1731_s23 = smov %s1531_s30 }
 0x211   : > { %s1732_s24 = smov %s1520_s27  ;;  %18 = sbr.rel (!%p16_p2) target bundleno = 3 (0x3), region = 87 }
 0x216   :  { %1242 = vsyncpa [#allocation3], 1 }
 0x217   :  { %1244 = vsyncpa [#allocation3 + $0x1], 1 }

</bundles_post_ra>
